<compile_context>
chip_gen: v5e
topology: v5e:2x2
jax: 0.10.0
libtpu: 0.0.40
codegen_flags: <defaults>
</compile_context>

<pallas_src>
import functools

import jax
import jax.numpy as jnp
from jax.experimental import pallas as pl
from jax.experimental.pallas import tpu as pltpu


# ---------------- model hyper-parameters (small, deterministic) ----------------
N_FILT = 32          # n_filters of the free filterbank encoder
KERNEL = 16          # filterbank kernel size L
HOP = KERNEL // 2    # stride (50% overlap)
N_SRC = 2            # number of sources estimated by the masker


def _round_up(x, m):
    return ((x + m - 1) // m) * m


# ---------------------------- Pallas kernel ------------------------------------
def tasnet_kernel(frames_ref, wenc_ref, wmask_ref, bmask_ref, wdec_ref, out_ref):
    """One row tile (batch folded into rows) per grid step.

    frames_ref: (TILE_R, KERNEL)              f32   framed waveform rows
    wenc_ref:   (KERNEL, N_FILT)              f32   encoder weight
    wmask_ref:  (N_FILT, N_SRC*N_FILT)        f32   masker 1x1-conv weight
    bmask_ref:  (1, N_SRC*N_FILT)             f32   masker bias
    wdec_ref:   (N_SRC*N_FILT, N_SRC*KERNEL)  f32   block-diag decoder weight
    out_ref:    (TILE_R, N_SRC*KERNEL)        f32   packed decoder frames
    """
    # Encoder: framed Conv1d == one MXU matmul.
    tf = jnp.dot(frames_ref[...], wenc_ref[...],
                 preferred_element_type=jnp.float32)                 # (TILE_R, N)

    # Masker: 1x1 conv over filters + sigmoid.
    logits = jnp.dot(tf, wmask_ref[...],
                     preferred_element_type=jnp.float32)             # (TILE_R, S*N)
    masks = jax.nn.sigmoid(logits + bmask_ref[...])                  # (TILE_R, S*N)

    # masked_tf for all sources side by side on the lane axis: [m0*tf | m1*tf | ...]
    tf_rep = jnp.concatenate([tf] * N_SRC, axis=-1)                  # (TILE_R, S*N)
    masked = masks * tf_rep                                          # (TILE_R, S*N)

    # Decoder: a single matmul against the block-diagonal ConvTranspose1d weight.
    dec = jnp.dot(masked, wdec_ref[...],
                  preferred_element_type=jnp.float32)                # (TILE_R, S*L)
    out_ref[...] = dec


# ------------------------------ wrapper ----------------------------------------
@functools.partial(jax.jit, static_argnames=("tile_rows",))
def base_tasnet_forward(wav, w_enc, w_mask, b_mask, w_dec, *, tile_rows=None):
    """Reproduces BaseTasNet.forward semantics.

    wav: 1D (time,), 2D (batch, time) or 3D (batch, 1, time), float32.
    Returns (batch, n_src, time) or (n_src, time) if input was 1D.
    """
    was_one_d = wav.ndim == 1
    if wav.ndim == 1:
        x = wav[None, :]
    elif wav.ndim == 3:
        x = wav[:, 0, :]
    else:
        x = wav
    B, time = x.shape

    T = (time - KERNEL) // HOP + 1
    dec_len = (T + 1) * HOP                       # == (T - 1) * HOP + KERNEL

    # --- framing: reshape + slice + concat (no gather) ---
    panels = x[:, :(T + 1) * HOP].reshape(B, T + 1, HOP)
    frames = jnp.concatenate([panels[:, :T, :], panels[:, 1:, :]], axis=-1)   # (B, T, L)
    frames = frames.reshape(B * T, KERNEL).astype(jnp.float32)

    rows = B * T
    if tile_rows is None:
        tile_r = 2048 if rows >= 2048 else _round_up(rows, 8)
    else:
        tile_r = _round_up(tile_rows, 8)          # f32 sublane packing -> multiples of 8
    rows_pad = _round_up(rows, tile_r)
    if rows_pad > rows:
        frames = jnp.pad(frames, ((0, rows_pad - rows), (0, 0)))

    # --- weights: f32 MXU operands; block-diag decoder weight over sources ---
    w_dec_bd = jnp.zeros((N_SRC * N_FILT, N_SRC * KERNEL), jnp.float32)
    for s in range(N_SRC):
        w_dec_bd = w_dec_bd.at[s * N_FILT:(s + 1) * N_FILT,
                               s * KERNEL:(s + 1) * KERNEL].set(w_dec)

    num_tiles = rows_pad // tile_r
    dec_frames = pl.pallas_call(
        tasnet_kernel,
        out_shape=jax.ShapeDtypeStruct((rows_pad, N_SRC * KERNEL), jnp.float32),
        grid=(num_tiles,),
        in_specs=[
            pl.BlockSpec((tile_r, KERNEL), lambda r: (r, 0)),
            pl.BlockSpec((KERNEL, N_FILT), lambda r: (0, 0)),
            pl.BlockSpec((N_FILT, N_SRC * N_FILT), lambda r: (0, 0)),
            pl.BlockSpec((1, N_SRC * N_FILT), lambda r: (0, 0)),
            pl.BlockSpec((N_SRC * N_FILT, N_SRC * KERNEL), lambda r: (0, 0)),
        ],
        out_specs=pl.BlockSpec((tile_r, N_SRC * KERNEL), lambda r: (r, 0)),
        compiler_params=pltpu.CompilerParams(dimension_semantics=("parallel",)),
    )(frames, w_enc.astype(jnp.float32), w_mask.astype(jnp.float32),
      b_mask.astype(jnp.float32), w_dec_bd)

    # --- 50% overlap-add + pad_x_to_y in the wrapper (kernel stores stay lane-dense) ---
    dec = dec_frames[:rows].reshape(B, T, N_SRC, KERNEL).transpose(0, 2, 1, 3)  # (B,S,T,L)
    zpad = jnp.zeros((B, N_SRC, 1, HOP), jnp.float32)
    ola = (jnp.concatenate([dec[..., :HOP], zpad], axis=2)
           + jnp.concatenate([zpad, dec[..., HOP:]], axis=2))                   # (B,S,T+1,HOP)
    out_wavs = ola.reshape(B, N_SRC, dec_len)

    pad = time - dec_len
    if pad > 0:
        out_wavs = jnp.pad(out_wavs, ((0, 0), (0, 0), (0, pad)))
    out_wavs = out_wavs[:, :, :time]

    if was_one_d:
        return out_wavs[0]
    return out_wavs


# ------------------------- pure-JAX reference (for checking) --------------------
def reference_forward(wav, w_enc, w_mask, b_mask, w_dec):
    """Mirrors the kernel's math (all f32)."""
    if wav.ndim == 1:
        x = wav[None, :]
    elif wav.ndim == 3:
        x = wav[:, 0, :]
    else:
        x = wav
    B, time = x.shape
    T = (time - KERNEL) // HOP + 1
    idx = jnp.arange(T)[:, None] * HOP + jnp.arange(KERNEL)[None, :]
    frames = x[:, idx].astype(jnp.float32)                                   # (B, T, L)
    tf = jnp.einsum("btl,ln->btn", frames, w_enc,
                    preferred_element_type=jnp.float32)                      # (B, T, N)
    logits = jnp.einsum("btn,nm->btm", tf, w_mask,
                        preferred_element_type=jnp.float32) + b_mask
    masks = jax.nn.sigmoid(logits).reshape(B, T, N_SRC, N_FILT)
    masked = masks * tf[:, :, None, :]                                       # (B, T, S, N)
    dec = jnp.einsum("btsn,nl->bstl", masked, w_dec,
                     preferred_element_type=jnp.float32)                     # (B, S, T, L)
    dec_len = (T - 1) * HOP + KERNEL
    out = jnp.zeros((B, N_SRC, dec_len), jnp.float32)
    for t in range(T):
        out = out.at[:, :, t * HOP:t * HOP + KERNEL].add(dec[:, :, t, :])
    pad = time - dec_len
    out = jnp.pad(out, ((0, 0), (0, 0), (0, max(pad, 0))))[:, :, :time]
    return out


# ------------------------------- main -------------------------------------------
if __name__ == "__main__":
    key = jax.random.PRNGKey(0)
    k_wav, k_enc, k_mask_w, k_mask_b, k_dec = jax.random.split(key, 5)

    B = 2
    TIME = 136  # -> T = (136 - 16)//8 + 1 = 16 frames/batch, 32 rows total; dec_len = 136

    wav = jax.random.normal(k_wav, (B, TIME), dtype=jnp.float32)

    # Deterministic synthetic parameters (shapes follow torch Conv1d / ConvTranspose1d weights).
    # Encoder Conv1d(1, N, L) weight (N, 1, L) -> stored transposed as (L, N).
    w_enc = 0.1 * jax.random.normal(k_enc, (KERNEL, N_FILT), dtype=jnp.float32)
    # Masker Conv1d(N, n_src*N, 1) weight -> stored as (N, n_src*N), bias (1, n_src*N).
    w_mask = 0.1 * jax.random.normal(k_mask_w, (N_FILT, N_SRC * N_FILT), dtype=jnp.float32)
    b_mask = 0.1 * jax.random.normal(k_mask_b, (1, N_SRC * N_FILT), dtype=jnp.float32)
    # Decoder ConvTranspose1d(N, 1, L) weight (N, 1, L) -> stored as (N, L).
    w_dec = 0.1 * jax.random.normal(k_dec, (N_FILT, KERNEL), dtype=jnp.float32)

    # tile_rows=16 -> 2 parallel grid steps, exercising the tiled/grid path on this small input.
    out = base_tasnet_forward(wav, w_enc, w_mask, b_mask, w_dec, tile_rows=16)
    out = jax.block_until_ready(out)

    ref = reference_forward(wav, w_enc, w_mask, b_mask, w_dec)
    assert out.shape == (B, N_SRC, TIME), out.shape
    max_err = float(jnp.max(jnp.abs(out - ref)))
    assert jnp.allclose(out, ref, atol=2e-4, rtol=2e-4), max_err

    print("KERNEL_OK")
</pallas_src>

<mosaic_0001>
module attributes {stable_mosaic.version = 11 : i64} {
  func.func @tasnet_kernel(%arg0: i32, %arg1: memref<16x16xf32, #tpu.memory_space<vmem>>, %arg2: memref<16x32xf32, #tpu.memory_space<vmem>>, %arg3: memref<32x64xf32, #tpu.memory_space<vmem>>, %arg4: memref<1x64xf32, #tpu.memory_space<vmem>>, %arg5: memref<64x32xf32, #tpu.memory_space<vmem>>, %arg6: memref<16x32xf32, #tpu.memory_space<vmem>>) attributes {dimension_semantics = [#tpu.dimension_semantics<parallel>], iteration_bounds = array<i64: 2>, scalar_prefetch = 0 : i64, scratch_operands = 0 : i64, tpu.core_type = #tpu.core_type<tc>, window_params = [{transform_indices = @transform_0, window_bounds = array<i64: 16, 16>}, {pipeline_mode = #tpu.pipeline_mode<synchronous>, transform_indices = @transform_1, window_bounds = array<i64: 16, 32>}, {pipeline_mode = #tpu.pipeline_mode<synchronous>, transform_indices = @transform_2, window_bounds = array<i64: 32, 64>}, {pipeline_mode = #tpu.pipeline_mode<synchronous>, transform_indices = @transform_3, window_bounds = array<i64: 1, 64>}, {pipeline_mode = #tpu.pipeline_mode<synchronous>, transform_indices = @transform_4, window_bounds = array<i64: 64, 32>}, {transform_indices = @transform_5, window_bounds = array<i64: 16, 32>}]} {
    %c0 = arith.constant 0 : index
    %c0_0 = arith.constant 0 : index
    %0 = vector.load %arg1[%c0, %c0_0] : memref<16x16xf32, #tpu.memory_space<vmem>>, vector<16x16xf32>
    %c0_1 = arith.constant 0 : index
    %c0_2 = arith.constant 0 : index
    %1 = vector.load %arg2[%c0_1, %c0_2] : memref<16x32xf32, #tpu.memory_space<vmem>>, vector<16x32xf32>
    %cst = arith.constant dense<0.000000e+00> : vector<16x32xf32>
    %2 = tpu.matmul %0, %1, %cst {dimension_numbers = #tpu.dot_dimension_numbers<[1], [0], [0], [1], [0, 0, 1, 1], [], []>} : vector<16x16xf32>, vector<16x32xf32>, vector<16x32xf32> -> vector<16x32xf32>
    %c0_3 = arith.constant 0 : index
    %c0_4 = arith.constant 0 : index
    %3 = vector.load %arg3[%c0_3, %c0_4] : memref<32x64xf32, #tpu.memory_space<vmem>>, vector<32x64xf32>
    %cst_5 = arith.constant dense<0.000000e+00> : vector<16x64xf32>
    %4 = tpu.matmul %2, %3, %cst_5 {dimension_numbers = #tpu.dot_dimension_numbers<[1], [0], [0], [1], [0, 0, 1, 1], [], []>} : vector<16x32xf32>, vector<32x64xf32>, vector<16x64xf32> -> vector<16x64xf32>
    %c0_6 = arith.constant 0 : index
    %c0_7 = arith.constant 0 : index
    %5 = vector.load %arg4[%c0_6, %c0_7] : memref<1x64xf32, #tpu.memory_space<vmem>>, vector<1x64xf32>
    %6 = vector.broadcast %5 : vector<1x64xf32> to vector<16x64xf32>
    %7 = arith.addf %4, %6 : vector<16x64xf32>
    %8 = arith.negf %7 : vector<16x64xf32>
    %9 = math.exp %8 : vector<16x64xf32>
    %cst_8 = arith.constant 1.000000e+00 : f32
    %10 = vector.broadcast %cst_8 : f32 to vector<16x64xf32>
    %11 = arith.addf %10, %9 : vector<16x64xf32>
    %12 = arith.divf %10, %11 : vector<16x64xf32>
    %13 = tpu.concatenate %2, %2 in 1 : vector<16x32xf32>, vector<16x32xf32> -> vector<16x64xf32>
    %14 = arith.mulf %12, %13 : vector<16x64xf32>
    %c0_9 = arith.constant 0 : index
    %c0_10 = arith.constant 0 : index
    %15 = vector.load %arg5[%c0_9, %c0_10] : memref<64x32xf32, #tpu.memory_space<vmem>>, vector<64x32xf32>
    %cst_11 = arith.constant dense<0.000000e+00> : vector<16x32xf32>
    %16 = tpu.matmul %14, %15, %cst_11 {dimension_numbers = #tpu.dot_dimension_numbers<[1], [0], [0], [1], [0, 0, 1, 1], [], []>} : vector<16x64xf32>, vector<64x32xf32>, vector<16x32xf32> -> vector<16x32xf32>
    %c0_12 = arith.constant 0 : index
    %c0_13 = arith.constant 0 : index
    %17 = vector.load %arg6[%c0_12, %c0_13] : memref<16x32xf32, #tpu.memory_space<vmem>>, vector<16x32xf32>
    tpu.vector_store %arg6[%c0_12, %c0_13], %16 {strides = array<i32>} : memref<16x32xf32, #tpu.memory_space<vmem>>, vector<16x32xf32>,
    return
  }
  func.func @transform_0(%arg0: i32) -> (i32, i32) {
    %c0_i32 = arith.constant 0 : i32
    %c0_i32_0 = arith.constant 0 : i32
    return %arg0, %c0_i32 : i32, i32
  }
  func.func @transform_1(%arg0: i32) -> (i32, i32) {
    %c0_i32 = arith.constant 0 : i32
    %c0_i32_0 = arith.constant 0 : i32
    %c0_i32_1 = arith.constant 0 : i32
    return %c0_i32, %c0_i32_0 : i32, i32
  }
  func.func @transform_2(%arg0: i32) -> (i32, i32) {
    %c0_i32 = arith.constant 0 : i32
    %c0_i32_0 = arith.constant 0 : i32
    %c0_i32_1 = arith.constant 0 : i32
    return %c0_i32, %c0_i32_0 : i32, i32
  }
  func.func @transform_3(%arg0: i32) -> (i32, i32) {
    %c0_i32 = arith.constant 0 : i32
    %c0_i32_0 = arith.constant 0 : i32
    %c0_i32_1 = arith.constant 0 : i32
    return %c0_i32, %c0_i32_0 : i32, i32
  }
  func.func @transform_4(%arg0: i32) -> (i32, i32) {
    %c0_i32 = arith.constant 0 : i32
    %c0_i32_0 = arith.constant 0 : i32
    %c0_i32_1 = arith.constant 0 : i32
    return %c0_i32, %c0_i32_0 : i32, i32
  }
  func.func @transform_5(%arg0: i32) -> (i32, i32) {
    %c0_i32 = arith.constant 0 : i32
    %c0_i32_0 = arith.constant 0 : i32
    return %arg0, %c0_i32 : i32, i32
  }
}

</mosaic_0001>

<bundles_post_ra>
// kernel: base_tasnet_forward.1
= control target key start
LH: loop header
LB: loop body
LE: loop exit
PB: predicated region body
PF: predicated region fallthrough
CT: control target
= control target key end

     0   :  { %s528_s18 = smov 0   ;;  %s615_s0 = inlined_call_operand.vmem [shape: f32[32,16], index: 0, kind: input, shape index: {}]   ;;  %s616_s1 = inlined_call_operand.vmem [shape: f32[16,32], index: 1, kind: input, shape index: {}]   ;;  %s617_s2 = inlined_call_operand.vmem [shape: f32[32,64], index: 2, kind: input, shape index: {}]   ;;  %s618_s3 = inlined_call_operand.vmem [shape: f32[1,64], index: 3, kind: input, shape index: {}]   ;;  %s619_s4 = inlined_call_operand.vmem [shape: f32[64,32], index: 4, kind: input, shape index: {}]   ;;  %s620_s5 = inlined_call_operand.vmem [shape: f32[32,32], index: 5, kind: output, shape index: {}]  }
   0x1 LB: > { %s444_s19 = sadd.s32 4294967295, %s495_s18   ;;  %p448_p0 = scmp.ge.s32.totalorder %s495_s18, 1  ;;  %s495_s18 = sphi %s528_s18, %s15_s18  }
   0x2   : > { %p188_p1 = scmp.lt.s32.totalorder %s495_s18, 3 }
   0x4   : > { %p189_p2 = pnand %p448_p0, %p188_p1 }
   0x5   : > { %s449_s24 = sshll.u32 (!%p189_p2), %s444_s19, 1  ;;  %s497_s12 = smov (!%p189_p2), 32  }
   0x6   : > { %192 = sbr.rel (%p189_p2) target bundleno = 440 (0x1b8), region = 40  ;;  %p217_p3 = scmp.lt.s32.totalorder (!%p189_p2), %s449_s24, 3 }
   0xb   : > { %v231_v0 = vld [vmem:[%s616_s1 + $0x8] sm:$0xff]  ;;  %v230_v1 = vld [vmem:[%s616_s1] sm:$0xff]  ;;  %v265_v2 = vld [vmem:[%s617_s2 + $0x18] sm:$0xff]  ;;  %s622_s24 = smov (!%p217_p3, %s449_s24), 3  ;;  %vm232_vm0 = vcmask 130048   ;;  %vm270_vm1 = vcmask 261120  }
   0xc   : > { %253 = vmatpush.msra.mxu0 %v231_v0  ;;  %289 = vmatpush.msra.mxu1 %v265_v2  ;;  %v264_v3 = vld [vmem:[%s617_s2 + $0x10] sm:$0xff]  ;;  %v263_v4 = vld [vmem:[%s617_s2 + $0x8] sm:$0xff]  ;;  %s450_s6 = sshll.u32 %s622_s24, 3  ;;  %v262_v7 = vld [vmem:[%s617_s2] sm:$0xff]  ;;  %vm356_vm6 = vcmask 523264  }
   0xd   : > { %s220_s9 = scalar_lea.vmem %s615_s0, %s450_s6  ;;  %v355_v10 = vld [vmem:[%s619_s4 + $0x38] sm:$0xff]  ;;  %v354_v11 = vld [vmem:[%s619_s4 + $0x30] sm:$0xff]  ;;  %v353_v12 = vld [vmem:[%s619_s4 + $0x28] sm:$0xff]  ;;  %s226_s11 = scalar_lea.vmem %s620_s5, %s450_s6 }
   0xe   : > { %254 = vmatpush.msra.mxu0 %v230_v1  ;;  %290 = vmatpush.msra.mxu1 %v264_v3  ;;  %v228_v5 = vld [vmem:[%s220_s9] sm:$0xff]  ;;  %v229_v6 = vld [vmem:[%s220_s9 + $0x8] sm:$0xff]  ;;  %v351_v14 = vld [vmem:[%s619_s4 + $0x18] sm:$0xff] }
   0xf   : > { %453 = vmatmul.msk.f32.vlgmr.msra.gmra.mxu0 %vm232_vm0, %v228_v5  ;;  %371 = vmatpush.msra.mxu2 %v355_v10  ;;  %v352_v13 = vld [vmem:[%s619_s4 + $0x20] sm:$0xff]  ;;  %v350_v15 = vld [vmem:[%s619_s4 + $0x10] sm:$0xff]  ;;  %v349_v17 = vld [vmem:[%s619_s4 + $0x8] sm:$0xff] }
  0x10   : > { %291 = vmatpush.msra.mxu1 %v263_v4  ;;  %463 = vmatpush.msra.mxu3 %v355_v10  ;;  %v480_v16 = vld [vmem:[%s618_s3] ss:$0 sm:$0xff] }
  0x11   : > { %372 = vmatpush.msra.mxu2 %v354_v11  ;;  %v348_v18 = vld [vmem:[%s619_s4] sm:$0xff] }
  0x12   : > { %292 = vmatpush.msra.mxu1 %v262_v7  ;;  %464 = vmatpush.msra.mxu3 %v354_v11 }
  0x13   : > { %373 = vmatpush.msra.mxu2 %v353_v12 }
  0x14   : > { %465 = vmatpush.msra.mxu3 %v353_v12 }
  0x15   : > { %374 = vmatpush.msra.mxu2 %v352_v13 }
  0x16   : > { %466 = vmatpush.msra.mxu3 %v352_v13 }
  0x17   : > { %454 = vmatmul.msk.f32.gmra.mxu0 %vm232_vm0, %v229_v6  ;;  %375 = vmatpush.msra.mxu2 %v351_v14 }
  0x18   : > { %467 = vmatpush.msra.mxu3 %v351_v14 }
  0x19   : > { %376 = vmatpush.msra.mxu2 %v350_v15 }
  0x1a   : > { %468 = vmatpush.msra.mxu3 %v350_v15 }
  0x1b   : > { %377 = vmatpush.msra.mxu2 %v349_v17 }
  0x1c   : > { %469 = vmatpush.msra.mxu3 %v349_v17 }
  0x1d   : > { %378 = vmatpush.msra.mxu2 %v348_v18 }
  0x1e   : > { %470 = vmatpush.msra.mxu3 %v348_v18 }
  0x8c   : > { %v562_v8 = vpop.f32.mrf.mxu0 }
  0x8d   : > { %338 = vrot.lane.b32.xlu0 %v562_v8, %s497_s12  ;;  %455 = vmatmul.msk.f32.vlgmr.msra.gmra.mxu1 %vm270_vm1, %v562_v8 }
  0x94   : > { %v567_v9 = vpop.f32.mrf.mxu0 }
  0x95   : > { %340 = vrot.lane.b32.xlu0 %v567_v9, %s497_s12  ;;  %456 = vmatmul.msk.f32.gmra.mxu1 %vm270_vm1, %v567_v9 }
  0xff   : > { %v339_v33 = vpop.permute.xlu0 %338 }
 0x100   : > { %v344_v41 = vsel %vm270_vm1, %v562_v8, %v339_v33 }
 0x107   : > { %v341_v48 = vpop.permute.xlu0 %340 }
 0x108   : > { %v345_v52 = vsel %vm270_vm1, %v567_v9, %v341_v48 }
 0x10a   : > { %v294_v19 = vpop.f32.mrf.mxu1 }
 0x10b   : > { %v295_v20 = vadd.f32 %v480_v16, %v294_v19 }
 0x10d   : > { %v457_v21 = vmul.f32 -1.442695, %v295_v20 }
 0x10f   : > { %481 = vpow2.f32 %v457_v21 }
 0x112   : > { %v297_v22 = vpop.f32.mrf.mxu1 }
 0x113   : > { %v298_v23 = vadd.f32 %v480_v16, %v297_v22 }
 0x115   : > { %v482_v24 = vpop.eup %481  ;;  %v458_v25 = vmul.f32 -1.442695, %v298_v23 }
 0x116   : > { %v306_v26 = vadd.f32 1.0, %v482_v24 }
 0x117   : > { %483 = vpow2.f32 %v458_v25 }
 0x118   : > { %485 = vrcp.f32 %v306_v26  ;;  %v319_v32 = vand.u32 2147483648, %v306_v26  ;;  %v317_v35 = vand.u32 2147483647, %v306_v26  ;;  %vm313_vm3 = vweird.f32 %v306_v26 }
 0x11a   : > { %v320_v38 = vor.u32 1.1754944e-38, %v319_v32  ;;  %vm318_vm5 = vcmp.eq.f32.partialorder %v317_v35, 8.507059e+37 }
 0x11d   : > { %v484_v27 = vpop.eup %483 }
 0x11e   : > { %v486_v28 = vpop.eup %485  ;;  %v307_v29 = vadd.f32 1.0, %v484_v27 }
 0x11f   : > { %v309_v30 = vmul.f32 %v486_v28, %v306_v26  ;;  %vm314_vm2 = vweird.f32 %v486_v28 }
 0x120   : > { %487 = vrcp.f32 %v307_v29  ;;  %vm315_vm4 = vmor %vm313_vm3, %vm314_vm2  ;;  %v334_v45 = vand.u32 2147483648, %v307_v29  ;;  %v332_v47 = vand.u32 2147483647, %v307_v29  ;;  %vm328_vm8 = vweird.f32 %v307_v29 }
 0x121   : > { %v310_v31 = vsub.f32 1.0, %v309_v30 }
 0x122   : > { %v335_v50 = vor.u32 1.1754944e-38, %v334_v45  ;;  %vm333_vm10 = vcmp.eq.f32.partialorder %v332_v47, 8.507059e+37 }
 0x123   : > { %v311_v34 = vmul.f32 %v486_v28, %v310_v31 }
 0x125   : > { %v312_v36 = vadd.f32 %v486_v28, %v311_v34 }
 0x126   : > { %v488_v37 = vpop.eup %487 }
 0x127   : > { %v324_v39 = vmul.f32 %v488_v37, %v307_v29  ;;  %v316_v40 = vsel %vm315_vm4, %v486_v28, %v312_v36  ;;  %vm329_vm7 = vweird.f32 %v488_v37 }
 0x128   : > { %v321_v42 = vsel %vm318_vm5, %v320_v38, %v316_v40  ;;  %vm330_vm9 = vmor %vm328_vm8, %vm329_vm7 }
 0x129   : > { %v346_v43 = vmul.f32 %v344_v41, %v321_v42  ;;  %v325_v44 = vsub.f32 1.0, %v324_v39 }
 0x12b   : > { %459 = vmatmul.msk.f32.vlgmr.msra.gmra.mxu2 %vm356_vm6, %v346_v43  ;;  %v326_v46 = vmul.f32 %v488_v37, %v325_v44 }
 0x12d   : > { %v327_v49 = vadd.f32 %v488_v37, %v326_v46 }
 0x12f   : > { %v331_v51 = vsel %vm330_vm9, %v488_v37, %v327_v49 }
 0x130   : > { %v336_v53 = vsel %vm333_vm10, %v335_v50, %v331_v51 }
 0x131   : > { %v347_v54 = vmul.f32 %v345_v52, %v336_v53 }
 0x133   : > { %460 = vmatmul.msk.f32.vlgmr.msra.gmra.mxu3 %vm356_vm6, %v347_v54 }
 0x1ae   : > { %v380_v55 = vpop.f32.mrf.mxu2 }
 0x1af   : > { %386 = vst.msk [vmem:[%s226_s11] sm:$0xff] %vm270_vm1, %v380_v55 }
 0x1b6   : > { %v383_v56 = vpop.f32.mrf.mxu3 }
 0x1b7   : > { %387 = vst.msk [vmem:[%s226_s11 + $0x8] sm:$0xff] %vm270_vm1, %v383_v56 }
 0x1b8 PF: > { %s15_s18 = sadd.s32 1, %s495_s18  }
 0x1b9   : > { %p12_p4 = scmp.ge.s32.totalorder %s15_s18, 4  }
 0x1bb   :  { %14 = sbr.rel (!%p12_p4) target bundleno = 1 (0x1), region = 70 }

</bundles_post_ra>
